<compile_context>
chip_gen: v7x
topology: tpu7x:2x2x1
jax: 0.10.0
libtpu: 0.0.40
codegen_flags: <defaults>
</compile_context>

<pallas_src>
import functools

import jax
import jax.numpy as jnp
from jax import lax
from jax.experimental import pallas as pl
from jax.experimental.pallas import tpu as pltpu


def _mha_kernel(x_ref, wq_ref, wk_ref, wv_ref, bq_ref, bk_ref, bv_ref,
                wp_ref, bp_ref, o_ref, kc_ref, vc_ref, oc_ref,
                *, tq, num_heads, head_dim):
    """One (batch, query-tile) pair per invocation; heads looped in-kernel.

    x_ref:  (1, N, C)  bf16  full sequence (resident across qi; DMA only on new b)
    wq/wk/wv_ref: (C, C) bf16  fused per-head projection weights (scale in wq)
    bq/bk/bv_ref: (1, C) f32   projection biases (scale folded into bq)
    wp_ref: (C, C)  bf16  output projection weight
    bp_ref: (1, C)  f32   output projection bias
    o_ref:  (1, TQ, C)    output query tile
    kc_ref/vc_ref: (N, C) bf16 scratch  per-batch K / V caches
    oc_ref: (TQ, C) f32  scratch  per-head output staging (lane-concat)
    """
    qi = pl.program_id(1)

    # ---- Fill the per-batch K/V caches once (first query tile of each b). ----
    @pl.when(qi == 0)
    def _():
        x_bf = x_ref[0]                                                  # [N, C]
        k_all = jnp.dot(x_bf, wk_ref[...],
                        preferred_element_type=jnp.float32) + bk_ref[...]
        v_all = jnp.dot(x_bf, wv_ref[...],
                        preferred_element_type=jnp.float32) + bv_ref[...]
        kc_ref[...] = k_all.astype(jnp.bfloat16)
        vc_ref[...] = v_all.astype(jnp.bfloat16)

    # ---- Fused Q projection across all heads (scale already folded in). ----
    q_start = pl.multiple_of(qi * tq, tq)
    xq = x_ref[0, pl.ds(q_start, tq), :]                                 # [TQ, C] bf16
    q = jnp.dot(xq, wq_ref[...],
                preferred_element_type=jnp.float32) + bq_ref[...]        # [TQ, C] f32
    q_bf = q.astype(jnp.bfloat16)

    k_all = kc_ref[...]                                                  # [N, C] bf16
    v_all = vc_ref[...]                                                  # [N, C] bf16

    # ---- Per-head attention (static unrolled loop; static lane slices). ----
    for h in range(num_heads):
        lo = h * head_dim
        hi = lo + head_dim
        q_h = q_bf[:, lo:hi]                                             # [TQ, Dh]
        k_h = k_all[:, lo:hi]                                            # [N, Dh]
        v_h = v_all[:, lo:hi]                                            # [N, Dh]

        # Scores: contract Dh of both operands (no explicit transpose).
        s = lax.dot_general(q_h, k_h,
                            dimension_numbers=(((1,), (1,)), ((), ())),
                            preferred_element_type=jnp.float32)          # [TQ, N]

        # Numerically-stable softmax with deferred normalization.
        s = s - jnp.max(s, axis=-1, keepdims=True)
        p = jnp.exp(s)                                                   # <= 1, bf16-safe
        l = jnp.sum(p, axis=-1, keepdims=True)                           # [TQ, 1] f32

        o_h = jnp.dot(p.astype(jnp.bfloat16), v_h,
                      preferred_element_type=jnp.float32)                # [TQ, Dh]
        o_h = o_h * pl.reciprocal(l, approx=True)                        # rescale [TQ,Dh], not [TQ,N]
        oc_ref[:, lo:hi] = o_h

    # ---- Single full-width output projection for all heads. ----
    o_cat = oc_ref[...].astype(jnp.bfloat16)                             # [TQ, C]
    out = jnp.dot(o_cat, wp_ref[...],
                  preferred_element_type=jnp.float32) + bp_ref[...]
    o_ref[0] = out.astype(o_ref.dtype)


def _vmem_limit_bytes():
    """~3/4 of physical VMEM (≈96 MiB on v5e/v6e, ≈48 MiB on v7x); safe fallback."""
    try:
        cap = int(pltpu.get_tpu_info().vmem_capacity_bytes)
    except Exception:
        cap = 64 * 1024 * 1024
    return cap * 3 // 4


def multi_head_attention(x, w_qkv, b_qkv, w_proj, b_proj, *, num_heads, tq=None):
    """x: [B, N, C] float32. w_qkv: [C, 3C], b_qkv: [3C], w_proj: [C, C],
    b_proj: [C]. Returns [B, N, C]."""
    B, N, C = x.shape
    assert C % num_heads == 0
    head_dim = C // num_heads
    scale = head_dim ** (-0.5)

    if tq is None:
        # 256 matches the v6e/v7x 256-row MXU; pass tq=128 explicitly on v5e.
        for cand in (256, 128):
            if N % cand == 0:
                tq = cand
                break
        else:
            tq = N
    assert N % tq == 0
    n_qt = N // tq

    # --- host-side parameter preparation (free, done once under jit) ---
    x_bf = x.astype(jnp.bfloat16)                                  # cast x once, outside kernel
    wq = (w_qkv[:, :C] * scale).astype(jnp.bfloat16)               # scale folded into Q
    wk = w_qkv[:, C:2 * C].astype(jnp.bfloat16)
    wv = w_qkv[:, 2 * C:].astype(jnp.bfloat16)
    bq = (b_qkv[:C] * scale).reshape(1, C).astype(jnp.float32)
    bk = b_qkv[C:2 * C].reshape(1, C).astype(jnp.float32)
    bv = b_qkv[2 * C:].reshape(1, C).astype(jnp.float32)
    wp = w_proj.astype(jnp.bfloat16)
    bp = b_proj.reshape(1, C).astype(jnp.float32)

    kernel = functools.partial(_mha_kernel, tq=tq, num_heads=num_heads,
                               head_dim=head_dim)

    # Constant index_maps => weights/biases are DMA'd once and stay resident.
    w_spec = pl.BlockSpec((C, C), lambda b, qi: (0, 0))
    b_spec = pl.BlockSpec((1, C), lambda b, qi: (0, 0))

    return pl.pallas_call(
        kernel,
        out_shape=jax.ShapeDtypeStruct((B, N, C), x.dtype),
        grid_spec=pltpu.PrefetchScalarGridSpec(
            num_scalar_prefetch=0,
            grid=(B, n_qt),
            in_specs=[
                pl.BlockSpec((1, N, C), lambda b, qi: (b, 0, 0)),  # x (bf16, full seq)
                w_spec,                                            # wq (scaled)
                w_spec,                                            # wk
                w_spec,                                            # wv
                b_spec,                                            # bq (scaled)
                b_spec,                                            # bk
                b_spec,                                            # bv
                w_spec,                                            # w_proj
                b_spec,                                            # b_proj
            ],
            out_specs=pl.BlockSpec((1, tq, C), lambda b, qi: (b, qi, 0)),
            scratch_shapes=[
                pltpu.VMEM((N, C), jnp.bfloat16),   # K cache (per batch element)
                pltpu.VMEM((N, C), jnp.bfloat16),   # V cache (per batch element)
                pltpu.VMEM((tq, C), jnp.float32),   # per-head output staging
            ],
        ),
        compiler_params=pltpu.CompilerParams(
            # K/V cache is filled at qi == 0, so only the batch axis is megacore
            # parallel (each core processes whole batches); qi stays sequential.
            dimension_semantics=("parallel", "arbitrary"),
            vmem_limit_bytes=_vmem_limit_bytes()),
    )(x_bf, wq, wk, wv, bq, bk, bv, wp, bp)


def _reference(x, w_qkv, b_qkv, w_proj, b_proj, *, num_heads):
    """Pure-JAX f32 mirror of the PyTorch standard-attention branch (eval mode)."""
    B, N, C = x.shape
    head_dim = C // num_heads
    scale = head_dim ** (-0.5)
    qkv = x @ w_qkv + b_qkv                                      # [B, N, 3C]
    qkv = qkv.reshape(B, N, 3, num_heads, head_dim)
    qkv = jnp.transpose(qkv, (2, 0, 3, 1, 4))                    # [3, B, H, N, Dh]
    q, k, v = qkv[0], qkv[1], qkv[2]
    attn = jnp.einsum("bhqd,bhkd->bhqk", q, k) * scale
    attn = jax.nn.softmax(attn, axis=-1)
    out = jnp.einsum("bhqk,bhkd->bhqd", attn, v)                 # [B, H, N, Dh]
    out = jnp.transpose(out, (0, 2, 1, 3)).reshape(B, N, C)
    return out @ w_proj + b_proj


if __name__ == "__main__":
    # Small shapes consistent with the module: x [B, N, C], dim=32, num_heads=4.
    B, N, C = 2, 8, 32
    num_heads = 4
    qkv_bias = False  # module default

    key = jax.random.PRNGKey(0)
    kx, kw1, kb1, kw2, kb2 = jax.random.split(key, 5)

    x = jax.random.normal(kx, (B, N, C), dtype=jnp.float32)

    # Deterministic parameter init (Linear weights stored as [in, out]).
    bound1 = 1.0 / (C ** 0.5)
    w_qkv = jax.random.uniform(kw1, (C, 3 * C), jnp.float32, -bound1, bound1)
    if qkv_bias:
        b_qkv = jax.random.uniform(kb1, (3 * C,), jnp.float32, -bound1, bound1)
    else:
        b_qkv = jnp.zeros((3 * C,), jnp.float32)
    w_proj = jax.random.uniform(kw2, (C, C), jnp.float32, -bound1, bound1)
    b_proj = jax.random.uniform(kb2, (C,), jnp.float32, -bound1, bound1)

    out = multi_head_attention(x, w_qkv, b_qkv, w_proj, b_proj, num_heads=num_heads)
    out = jax.block_until_ready(out)

    ref = _reference(x, w_qkv, b_qkv, w_proj, b_proj, num_heads=num_heads)
    assert out.shape == (B, N, C)
    # bf16 MXU path with f32 accumulation => ~1e-3..1e-2 deviation from the f32 reference.
    err = float(jnp.max(jnp.abs(out - ref)))
    assert jnp.allclose(out, ref, atol=3e-2, rtol=3e-2), err

    print("KERNEL_OK")
</pallas_src>

<mosaic_0001>
module attributes {stable_mosaic.version = 11 : i64} {
  func.func @_mha_kernel(%arg0: i32, %arg1: i32, %arg2: memref<1x8x32xbf16, #tpu.memory_space<vmem>>, %arg3: memref<32x32xbf16, #tpu.memory_space<vmem>>, %arg4: memref<32x32xbf16, #tpu.memory_space<vmem>>, %arg5: memref<32x32xbf16, #tpu.memory_space<vmem>>, %arg6: memref<1x32xf32, #tpu.memory_space<vmem>>, %arg7: memref<1x32xf32, #tpu.memory_space<vmem>>, %arg8: memref<1x32xf32, #tpu.memory_space<vmem>>, %arg9: memref<32x32xbf16, #tpu.memory_space<vmem>>, %arg10: memref<1x32xf32, #tpu.memory_space<vmem>>, %arg11: memref<1x8x32xf32, #tpu.memory_space<vmem>>, %arg12: memref<8x32xbf16, #tpu.memory_space<vmem>>, %arg13: memref<8x32xbf16, #tpu.memory_space<vmem>>, %arg14: memref<8x32xf32, #tpu.memory_space<vmem>>) attributes {dimension_semantics = [#tpu.dimension_semantics<parallel>, #tpu.dimension_semantics<arbitrary>], iteration_bounds = array<i64: 2, 1>, scalar_prefetch = 0 : i64, scratch_operands = 3 : i64, tpu.core_type = #tpu.core_type<tc>, window_params = [{transform_indices = @transform_0, window_bounds = array<i64: 1, 8, 32>}, {pipeline_mode = #tpu.pipeline_mode<synchronous>, transform_indices = @transform_1, window_bounds = array<i64: 32, 32>}, {pipeline_mode = #tpu.pipeline_mode<synchronous>, transform_indices = @transform_2, window_bounds = array<i64: 32, 32>}, {pipeline_mode = #tpu.pipeline_mode<synchronous>, transform_indices = @transform_3, window_bounds = array<i64: 32, 32>}, {pipeline_mode = #tpu.pipeline_mode<synchronous>, transform_indices = @transform_4, window_bounds = array<i64: 1, 32>}, {pipeline_mode = #tpu.pipeline_mode<synchronous>, transform_indices = @transform_5, window_bounds = array<i64: 1, 32>}, {pipeline_mode = #tpu.pipeline_mode<synchronous>, transform_indices = @transform_6, window_bounds = array<i64: 1, 32>}, {pipeline_mode = #tpu.pipeline_mode<synchronous>, transform_indices = @transform_7, window_bounds = array<i64: 32, 32>}, {pipeline_mode = #tpu.pipeline_mode<synchronous>, transform_indices = @transform_8, window_bounds = array<i64: 1, 32>}, {transform_indices = @transform_9, window_bounds = array<i64: 1, 8, 32>}]} {
    %c0_i32 = arith.constant 0 : i32
    %0 = arith.cmpi eq, %arg1, %c0_i32 : i32
    %1 = arith.extui %0 : i1 to i32
    %c0_i32_0 = arith.constant 0 : i32
    %2 = arith.cmpi ne, %1, %c0_i32_0 : i32
    scf.if %2 {
      %c0_41 = arith.constant 0 : index
      %c0_42 = arith.constant 0 : index
      %c0_43 = arith.constant 0 : index
      %94 = vector.load %arg2[%c0_41, %c0_42, %c0_43] : memref<1x8x32xbf16, #tpu.memory_space<vmem>>, vector<1x8x32xbf16>
      %95 = vector.shape_cast %94 : vector<1x8x32xbf16> to vector<8x32xbf16>
      %c0_44 = arith.constant 0 : index
      %c0_45 = arith.constant 0 : index
      %96 = vector.load %arg4[%c0_44, %c0_45] : memref<32x32xbf16, #tpu.memory_space<vmem>>, vector<32x32xbf16>
      %cst_46 = arith.constant dense<0.000000e+00> : vector<8x32xf32>
      %97 = tpu.matmul %95, %96, %cst_46 {dimension_numbers = #tpu.dot_dimension_numbers<[1], [0], [0], [1], [0, 0, 1, 1], [], []>} : vector<8x32xbf16>, vector<32x32xbf16>, vector<8x32xf32> -> vector<8x32xf32>
      %c0_47 = arith.constant 0 : index
      %c0_48 = arith.constant 0 : index
      %98 = vector.load %arg7[%c0_47, %c0_48] : memref<1x32xf32, #tpu.memory_space<vmem>>, vector<1x32xf32>
      %99 = vector.broadcast %98 : vector<1x32xf32> to vector<8x32xf32>
      %100 = arith.addf %97, %99 : vector<8x32xf32>
      %c0_49 = arith.constant 0 : index
      %c0_50 = arith.constant 0 : index
      %101 = vector.load %arg5[%c0_49, %c0_50] : memref<32x32xbf16, #tpu.memory_space<vmem>>, vector<32x32xbf16>
      %cst_51 = arith.constant dense<0.000000e+00> : vector<8x32xf32>
      %102 = tpu.matmul %95, %101, %cst_51 {dimension_numbers = #tpu.dot_dimension_numbers<[1], [0], [0], [1], [0, 0, 1, 1], [], []>} : vector<8x32xbf16>, vector<32x32xbf16>, vector<8x32xf32> -> vector<8x32xf32>
      %c0_52 = arith.constant 0 : index
      %c0_53 = arith.constant 0 : index
      %103 = vector.load %arg8[%c0_52, %c0_53] : memref<1x32xf32, #tpu.memory_space<vmem>>, vector<1x32xf32>
      %104 = vector.broadcast %103 : vector<1x32xf32> to vector<8x32xf32>
      %105 = arith.addf %102, %104 : vector<8x32xf32>
      %106 = arith.truncf %100 : vector<8x32xf32> to vector<8x32xbf16>
      %c0_54 = arith.constant 0 : index
      %c0_55 = arith.constant 0 : index
      %107 = vector.load %arg12[%c0_54, %c0_55] : memref<8x32xbf16, #tpu.memory_space<vmem>>, vector<8x32xbf16>
      tpu.vector_store %arg12[%c0_54, %c0_55], %106 {strides = array<i32>} : memref<8x32xbf16, #tpu.memory_space<vmem>>, vector<8x32xbf16>,
      %108 = arith.truncf %105 : vector<8x32xf32> to vector<8x32xbf16>
      %c0_56 = arith.constant 0 : index
      %c0_57 = arith.constant 0 : index
      %109 = vector.load %arg13[%c0_56, %c0_57] : memref<8x32xbf16, #tpu.memory_space<vmem>>, vector<8x32xbf16>
      tpu.vector_store %arg13[%c0_56, %c0_57], %108 {strides = array<i32>} : memref<8x32xbf16, #tpu.memory_space<vmem>>, vector<8x32xbf16>,
    } else {
    }
    %c8_i32 = arith.constant 8 : i32
    %3 = arith.muli %arg1, %c8_i32 : i32
    %4 = tpu.assume_multiple %3, 8 : i32
    %c0 = arith.constant 0 : index
    %5 = arith.index_cast %4 : i32 to index
    %c0_1 = arith.constant 0 : index
    %6 = vector.load %arg2[%c0, %5, %c0_1] : memref<1x8x32xbf16, #tpu.memory_space<vmem>>, vector<1x8x32xbf16>
    %7 = vector.shape_cast %6 : vector<1x8x32xbf16> to vector<8x32xbf16>
    %c0_2 = arith.constant 0 : index
    %c0_3 = arith.constant 0 : index
    %8 = vector.load %arg3[%c0_2, %c0_3] : memref<32x32xbf16, #tpu.memory_space<vmem>>, vector<32x32xbf16>
    %cst = arith.constant dense<0.000000e+00> : vector<8x32xf32>
    %9 = tpu.matmul %7, %8, %cst {dimension_numbers = #tpu.dot_dimension_numbers<[1], [0], [0], [1], [0, 0, 1, 1], [], []>} : vector<8x32xbf16>, vector<32x32xbf16>, vector<8x32xf32> -> vector<8x32xf32>
    %c0_4 = arith.constant 0 : index
    %c0_5 = arith.constant 0 : index
    %10 = vector.load %arg6[%c0_4, %c0_5] : memref<1x32xf32, #tpu.memory_space<vmem>>, vector<1x32xf32>
    %11 = vector.broadcast %10 : vector<1x32xf32> to vector<8x32xf32>
    %12 = arith.addf %9, %11 : vector<8x32xf32>
    %13 = arith.truncf %12 : vector<8x32xf32> to vector<8x32xbf16>
    %c0_6 = arith.constant 0 : index
    %c0_7 = arith.constant 0 : index
    %14 = vector.load %arg12[%c0_6, %c0_7] : memref<8x32xbf16, #tpu.memory_space<vmem>>, vector<8x32xbf16>
    %c0_8 = arith.constant 0 : index
    %c0_9 = arith.constant 0 : index
    %15 = vector.load %arg13[%c0_8, %c0_9] : memref<8x32xbf16, #tpu.memory_space<vmem>>, vector<8x32xbf16>
    %16 = vector.extract_strided_slice %13 {offsets = [0, 0], sizes = [8, 8], strides = [1, 1]} : vector<8x32xbf16> to vector<8x8xbf16>
    %17 = vector.extract_strided_slice %14 {offsets = [0, 0], sizes = [8, 8], strides = [1, 1]} : vector<8x32xbf16> to vector<8x8xbf16>
    %18 = vector.extract_strided_slice %15 {offsets = [0, 0], sizes = [8, 8], strides = [1, 1]} : vector<8x32xbf16> to vector<8x8xbf16>
    %cst_10 = arith.constant dense<0.000000e+00> : vector<8x8xf32>
    %19 = tpu.matmul %16, %17, %cst_10 {dimension_numbers = #tpu.dot_dimension_numbers<[1], [1], [0], [0], [0, 0, 1, 0], [], []>} : vector<8x8xbf16>, vector<8x8xbf16>, vector<8x8xf32> -> vector<8x8xf32>
    %cst_11 = arith.constant dense<0xFF800000> : vector<8xf32>
    %20 = vector.multi_reduction <maximumf>, %19, %cst_11 [1] : vector<8x8xf32> to vector<8xf32>
    %21 = vector.shape_cast %20 : vector<8xf32> to vector<8x1xf32>
    %22 = vector.broadcast %21 : vector<8x1xf32> to vector<8x8xf32>
    %23 = arith.subf %19, %22 : vector<8x8xf32>
    %24 = math.exp %23 : vector<8x8xf32>
    %cst_12 = arith.constant dense<0.000000e+00> : vector<8xf32>
    %25 = vector.multi_reduction <add>, %24, %cst_12 [1] : vector<8x8xf32> to vector<8xf32>
    %26 = vector.shape_cast %25 : vector<8xf32> to vector<8x1xf32>
    %27 = arith.truncf %24 : vector<8x8xf32> to vector<8x8xbf16>
    %cst_13 = arith.constant dense<0.000000e+00> : vector<8x8xf32>
    %28 = tpu.matmul %27, %18, %cst_13 {dimension_numbers = #tpu.dot_dimension_numbers<[1], [0], [0], [1], [0, 0, 1, 1], [], []>} : vector<8x8xbf16>, vector<8x8xbf16>, vector<8x8xf32> -> vector<8x8xf32>
    %29 = tpu.reciprocal %26 {approx = true} : vector<8x1xf32> -> vector<8x1xf32>
    %30 = vector.broadcast %29 : vector<8x1xf32> to vector<8x8xf32>
    %31 = arith.mulf %28, %30 : vector<8x8xf32>
    %c0_14 = arith.constant 0 : index
    %c0_15 = arith.constant 0 : index
    %32 = vector.load %arg14[%c0_14, %c0_15] : memref<8x32xf32, #tpu.memory_space<vmem>>, vector<8x8xf32>
    tpu.vector_store %arg14[%c0_14, %c0_15], %31 {strides = array<i32>} : memref<8x32xf32, #tpu.memory_space<vmem>>, vector<8x8xf32>,
    %33 = vector.extract_strided_slice %13 {offsets = [0, 8], sizes = [8, 8], strides = [1, 1]} : vector<8x32xbf16> to vector<8x8xbf16>
    %34 = vector.extract_strided_slice %14 {offsets = [0, 8], sizes = [8, 8], strides = [1, 1]} : vector<8x32xbf16> to vector<8x8xbf16>
    %35 = vector.extract_strided_slice %15 {offsets = [0, 8], sizes = [8, 8], strides = [1, 1]} : vector<8x32xbf16> to vector<8x8xbf16>
    %cst_16 = arith.constant dense<0.000000e+00> : vector<8x8xf32>
    %36 = tpu.matmul %33, %34, %cst_16 {dimension_numbers = #tpu.dot_dimension_numbers<[1], [1], [0], [0], [0, 0, 1, 0], [], []>} : vector<8x8xbf16>, vector<8x8xbf16>, vector<8x8xf32> -> vector<8x8xf32>
    %cst_17 = arith.constant dense<0xFF800000> : vector<8xf32>
    %37 = vector.multi_reduction <maximumf>, %36, %cst_17 [1] : vector<8x8xf32> to vector<8xf32>
    %38 = vector.shape_cast %37 : vector<8xf32> to vector<8x1xf32>
    %39 = vector.broadcast %38 : vector<8x1xf32> to vector<8x8xf32>
    %40 = arith.subf %36, %39 : vector<8x8xf32>
    %41 = math.exp %40 : vector<8x8xf32>
    %cst_18 = arith.constant dense<0.000000e+00> : vector<8xf32>
    %42 = vector.multi_reduction <add>, %41, %cst_18 [1] : vector<8x8xf32> to vector<8xf32>
    %43 = vector.shape_cast %42 : vector<8xf32> to vector<8x1xf32>
    %44 = arith.truncf %41 : vector<8x8xf32> to vector<8x8xbf16>
    %cst_19 = arith.constant dense<0.000000e+00> : vector<8x8xf32>
    %45 = tpu.matmul %44, %35, %cst_19 {dimension_numbers = #tpu.dot_dimension_numbers<[1], [0], [0], [1], [0, 0, 1, 1], [], []>} : vector<8x8xbf16>, vector<8x8xbf16>, vector<8x8xf32> -> vector<8x8xf32>
    %46 = tpu.reciprocal %43 {approx = true} : vector<8x1xf32> -> vector<8x1xf32>
    %47 = vector.broadcast %46 : vector<8x1xf32> to vector<8x8xf32>
    %48 = arith.mulf %45, %47 : vector<8x8xf32>
    %c0_20 = arith.constant 0 : index
    %c8 = arith.constant 8 : index
    %49 = vector.load %arg14[%c0_20, %c8] : memref<8x32xf32, #tpu.memory_space<vmem>>, vector<8x8xf32>
    tpu.vector_store %arg14[%c0_20, %c8], %48 {strides = array<i32>} : memref<8x32xf32, #tpu.memory_space<vmem>>, vector<8x8xf32>,
    %50 = vector.extract_strided_slice %13 {offsets = [0, 16], sizes = [8, 8], strides = [1, 1]} : vector<8x32xbf16> to vector<8x8xbf16>
    %51 = vector.extract_strided_slice %14 {offsets = [0, 16], sizes = [8, 8], strides = [1, 1]} : vector<8x32xbf16> to vector<8x8xbf16>
    %52 = vector.extract_strided_slice %15 {offsets = [0, 16], sizes = [8, 8], strides = [1, 1]} : vector<8x32xbf16> to vector<8x8xbf16>
    %cst_21 = arith.constant dense<0.000000e+00> : vector<8x8xf32>
    %53 = tpu.matmul %50, %51, %cst_21 {dimension_numbers = #tpu.dot_dimension_numbers<[1], [1], [0], [0], [0, 0, 1, 0], [], []>} : vector<8x8xbf16>, vector<8x8xbf16>, vector<8x8xf32> -> vector<8x8xf32>
    %cst_22 = arith.constant dense<0xFF800000> : vector<8xf32>
    %54 = vector.multi_reduction <maximumf>, %53, %cst_22 [1] : vector<8x8xf32> to vector<8xf32>
    %55 = vector.shape_cast %54 : vector<8xf32> to vector<8x1xf32>
    %56 = vector.broadcast %55 : vector<8x1xf32> to vector<8x8xf32>
    %57 = arith.subf %53, %56 : vector<8x8xf32>
    %58 = math.exp %57 : vector<8x8xf32>
    %cst_23 = arith.constant dense<0.000000e+00> : vector<8xf32>
    %59 = vector.multi_reduction <add>, %58, %cst_23 [1] : vector<8x8xf32> to vector<8xf32>
    %60 = vector.shape_cast %59 : vector<8xf32> to vector<8x1xf32>
    %61 = arith.truncf %58 : vector<8x8xf32> to vector<8x8xbf16>
    %cst_24 = arith.constant dense<0.000000e+00> : vector<8x8xf32>
    %62 = tpu.matmul %61, %52, %cst_24 {dimension_numbers = #tpu.dot_dimension_numbers<[1], [0], [0], [1], [0, 0, 1, 1], [], []>} : vector<8x8xbf16>, vector<8x8xbf16>, vector<8x8xf32> -> vector<8x8xf32>
    %63 = tpu.reciprocal %60 {approx = true} : vector<8x1xf32> -> vector<8x1xf32>
    %64 = vector.broadcast %63 : vector<8x1xf32> to vector<8x8xf32>
    %65 = arith.mulf %62, %64 : vector<8x8xf32>
    %c0_25 = arith.constant 0 : index
    %c16 = arith.constant 16 : index
    %66 = vector.load %arg14[%c0_25, %c16] : memref<8x32xf32, #tpu.memory_space<vmem>>, vector<8x8xf32>
    tpu.vector_store %arg14[%c0_25, %c16], %65 {strides = array<i32>} : memref<8x32xf32, #tpu.memory_space<vmem>>, vector<8x8xf32>,
    %67 = vector.extract_strided_slice %13 {offsets = [0, 24], sizes = [8, 8], strides = [1, 1]} : vector<8x32xbf16> to vector<8x8xbf16>
    %68 = vector.extract_strided_slice %14 {offsets = [0, 24], sizes = [8, 8], strides = [1, 1]} : vector<8x32xbf16> to vector<8x8xbf16>
    %69 = vector.extract_strided_slice %15 {offsets = [0, 24], sizes = [8, 8], strides = [1, 1]} : vector<8x32xbf16> to vector<8x8xbf16>
    %cst_26 = arith.constant dense<0.000000e+00> : vector<8x8xf32>
    %70 = tpu.matmul %67, %68, %cst_26 {dimension_numbers = #tpu.dot_dimension_numbers<[1], [1], [0], [0], [0, 0, 1, 0], [], []>} : vector<8x8xbf16>, vector<8x8xbf16>, vector<8x8xf32> -> vector<8x8xf32>
    %cst_27 = arith.constant dense<0xFF800000> : vector<8xf32>
    %71 = vector.multi_reduction <maximumf>, %70, %cst_27 [1] : vector<8x8xf32> to vector<8xf32>
    %72 = vector.shape_cast %71 : vector<8xf32> to vector<8x1xf32>
    %73 = vector.broadcast %72 : vector<8x1xf32> to vector<8x8xf32>
    %74 = arith.subf %70, %73 : vector<8x8xf32>
    %75 = math.exp %74 : vector<8x8xf32>
    %cst_28 = arith.constant dense<0.000000e+00> : vector<8xf32>
    %76 = vector.multi_reduction <add>, %75, %cst_28 [1] : vector<8x8xf32> to vector<8xf32>
    %77 = vector.shape_cast %76 : vector<8xf32> to vector<8x1xf32>
    %78 = arith.truncf %75 : vector<8x8xf32> to vector<8x8xbf16>
    %cst_29 = arith.constant dense<0.000000e+00> : vector<8x8xf32>
    %79 = tpu.matmul %78, %69, %cst_29 {dimension_numbers = #tpu.dot_dimension_numbers<[1], [0], [0], [1], [0, 0, 1, 1], [], []>} : vector<8x8xbf16>, vector<8x8xbf16>, vector<8x8xf32> -> vector<8x8xf32>
    %80 = tpu.reciprocal %77 {approx = true} : vector<8x1xf32> -> vector<8x1xf32>
    %81 = vector.broadcast %80 : vector<8x1xf32> to vector<8x8xf32>
    %82 = arith.mulf %79, %81 : vector<8x8xf32>
    %c0_30 = arith.constant 0 : index
    %c24 = arith.constant 24 : index
    %83 = vector.load %arg14[%c0_30, %c24] : memref<8x32xf32, #tpu.memory_space<vmem>>, vector<8x8xf32>
    tpu.vector_store %arg14[%c0_30, %c24], %82 {strides = array<i32>} : memref<8x32xf32, #tpu.memory_space<vmem>>, vector<8x8xf32>,
    %c0_31 = arith.constant 0 : index
    %c0_32 = arith.constant 0 : index
    %84 = vector.load %arg14[%c0_31, %c0_32] : memref<8x32xf32, #tpu.memory_space<vmem>>, vector<8x32xf32>
    %85 = arith.truncf %84 : vector<8x32xf32> to vector<8x32xbf16>
    %c0_33 = arith.constant 0 : index
    %c0_34 = arith.constant 0 : index
    %86 = vector.load %arg9[%c0_33, %c0_34] : memref<32x32xbf16, #tpu.memory_space<vmem>>, vector<32x32xbf16>
    %cst_35 = arith.constant dense<0.000000e+00> : vector<8x32xf32>
    %87 = tpu.matmul %85, %86, %cst_35 {dimension_numbers = #tpu.dot_dimension_numbers<[1], [0], [0], [1], [0, 0, 1, 1], [], []>} : vector<8x32xbf16>, vector<32x32xbf16>, vector<8x32xf32> -> vector<8x32xf32>
    %c0_36 = arith.constant 0 : index
    %c0_37 = arith.constant 0 : index
    %88 = vector.load %arg10[%c0_36, %c0_37] : memref<1x32xf32, #tpu.memory_space<vmem>>, vector<1x32xf32>
    %89 = vector.broadcast %88 : vector<1x32xf32> to vector<8x32xf32>
    %90 = arith.addf %87, %89 : vector<8x32xf32>
    %c0_38 = arith.constant 0 : index
    %c0_39 = arith.constant 0 : index
    %c0_40 = arith.constant 0 : index
    %91 = vector.load %arg11[%c0_38, %c0_39, %c0_40] : memref<1x8x32xf32, #tpu.memory_space<vmem>>, vector<1x8x32xf32>
    %92 = vector.shape_cast %91 : vector<1x8x32xf32> to vector<8x32xf32>
    %93 = vector.shape_cast %90 : vector<8x32xf32> to vector<1x8x32xf32>
    tpu.vector_store %arg11[%c0_38, %c0_39, %c0_40], %93 {strides = array<i32>} : memref<1x8x32xf32, #tpu.memory_space<vmem>>, vector<1x8x32xf32>,
    return
  }
  func.func @transform_0(%arg0: i32, %arg1: i32) -> (i32, i32, i32) {
    %c0_i32 = arith.constant 0 : i32
    %c0_i32_0 = arith.constant 0 : i32
    %c0_i32_1 = arith.constant 0 : i32
    return %arg0, %c0_i32, %c0_i32_0 : i32, i32, i32
  }
  func.func @transform_1(%arg0: i32, %arg1: i32) -> (i32, i32) {
    %c0_i32 = arith.constant 0 : i32
    %c0_i32_0 = arith.constant 0 : i32
    %c0_i32_1 = arith.constant 0 : i32
    return %c0_i32, %c0_i32_0 : i32, i32
  }
  func.func @transform_2(%arg0: i32, %arg1: i32) -> (i32, i32) {
    %c0_i32 = arith.constant 0 : i32
    %c0_i32_0 = arith.constant 0 : i32
    %c0_i32_1 = arith.constant 0 : i32
    return %c0_i32, %c0_i32_0 : i32, i32
  }
  func.func @transform_3(%arg0: i32, %arg1: i32) -> (i32, i32) {
    %c0_i32 = arith.constant 0 : i32
    %c0_i32_0 = arith.constant 0 : i32
    %c0_i32_1 = arith.constant 0 : i32
    return %c0_i32, %c0_i32_0 : i32, i32
  }
  func.func @transform_4(%arg0: i32, %arg1: i32) -> (i32, i32) {
    %c0_i32 = arith.constant 0 : i32
    %c0_i32_0 = arith.constant 0 : i32
    %c0_i32_1 = arith.constant 0 : i32
    return %c0_i32, %c0_i32_0 : i32, i32
  }
  func.func @transform_5(%arg0: i32, %arg1: i32) -> (i32, i32) {
    %c0_i32 = arith.constant 0 : i32
    %c0_i32_0 = arith.constant 0 : i32
    %c0_i32_1 = arith.constant 0 : i32
    return %c0_i32, %c0_i32_0 : i32, i32
  }
  func.func @transform_6(%arg0: i32, %arg1: i32) -> (i32, i32) {
    %c0_i32 = arith.constant 0 : i32
    %c0_i32_0 = arith.constant 0 : i32
    %c0_i32_1 = arith.constant 0 : i32
    return %c0_i32, %c0_i32_0 : i32, i32
  }
  func.func @transform_7(%arg0: i32, %arg1: i32) -> (i32, i32) {
    %c0_i32 = arith.constant 0 : i32
    %c0_i32_0 = arith.constant 0 : i32
    %c0_i32_1 = arith.constant 0 : i32
    return %c0_i32, %c0_i32_0 : i32, i32
  }
  func.func @transform_8(%arg0: i32, %arg1: i32) -> (i32, i32) {
    %c0_i32 = arith.constant 0 : i32
    %c0_i32_0 = arith.constant 0 : i32
    %c0_i32_1 = arith.constant 0 : i32
    return %c0_i32, %c0_i32_0 : i32, i32
  }
  func.func @transform_9(%arg0: i32, %arg1: i32) -> (i32, i32, i32) {
    %c0_i32 = arith.constant 0 : i32
    %c0_i32_0 = arith.constant 0 : i32
    return %arg0, %arg1, %c0_i32 : i32, i32, i32
  }
}

</mosaic_0001>

<bundles_post_ra>
// kernel: tpu_custom_call.1
= control target key start
LH: loop header
LB: loop body
LE: loop exit
PB: predicated region body
PF: predicated region fallthrough
CT: control target
= control target key end

     0   :  { %s2216_s0 = inlined_call_operand.hbm [shape: bf16[2,8,32], index: 0, kind: input, shape index: {}]   ;;  %s2217_s1 = inlined_call_operand.hbm [shape: bf16[32,32], index: 1, kind: input, shape index: {}]   ;;  %s2218_s2 = inlined_call_operand.hbm [shape: bf16[32,32], index: 2, kind: input, shape index: {}]   ;;  %s2219_s3 = inlined_call_operand.hbm [shape: bf16[32,32], index: 3, kind: input, shape index: {}]   ;;  %s2220_s4 = inlined_call_operand.vmem [shape: f32[1,32], index: 4, kind: input, shape index: {}]   ;;  %s2221_s5 = inlined_call_operand.vmem [shape: f32[1,32], index: 5, kind: input, shape index: {}]   ;;  %s2222_s6 = inlined_call_operand.vmem [shape: f32[1,32], index: 6, kind: input, shape index: {}]   ;;  %s2223_s7 = inlined_call_operand.vmem [shape: bf16[32,32], index: 7, kind: input, shape index: {}]   ;;  %s2224_s8 = inlined_call_operand.vmem [shape: f32[1,32], index: 8, kind: input, shape index: {}]   ;;  %s2225_s9 = inlined_call_operand.hbm [shape: f32[2,8,32], index: 9, kind: output, shape index: {}]  }
   0x1   :  { %2234 = sst [smem:[#allocation21_spill]] %s2223_s7 }
   0x2   :  { %2235 = sst [smem:[#allocation22_spill]] %s2224_s8 }
   0x3   :  { %2236 = sst [smem:[#allocation23_spill]] %s2225_s9 }
   0x4   :  { %14 = vsyncpa [#allocation6], 0 }
   0x5   :  { %16 = vsyncpa [#allocation6 + $0x1], 0 }
   0x6   :  { %17 = vsyncpa [#allocation9], 0 }
   0x7   :  { %18 = vsyncpa [#allocation12], 0 }
   0x8   :  { %19 = vsyncpa [#allocation7], 0 }
   0x9   :  { %21 = vsyncpa [#allocation7 + $0x1], 0  ;;  %s1832_s30 = smov 0   ;;  %s1834_s10 = smov 0  }
   0xa   :  { %s1836_s11 = smov 0   ;;  %s1838_s12 = smov 0  }
   0xb   :  { %s1840_s13 = smov 0   ;;  %s1842_s14 = smov 0  }
   0xc LB: > { %2237 = sst [smem:[#allocation18_spill]] %s1745_s30  ;;  %s1279_s15 = sadd.s32 4294967295, %s1765_s14   ;;  %s1765_s14 = sphi %s1842_s14, %s27_s14   ;;  %s1761_s13 = sphi %s1840_s13, %s2265_s13   ;;  %s1757_s12 = sphi %s1838_s12, %s2264_s12   ;;  %s1753_s11 = sphi %s1836_s11, %s2263_s11   ;;  %s1749_s10 = sphi %s1834_s10, %s2262_s10   ;;  %s1745_s30 = sphi %s1832_s30, %s2261_s30  }
   0xd   : > { %2238 = sst [smem:[#allocation19_spill]] %s1757_s12  ;;  %s1280_s16 = sadd.s32 4294967294, %s1765_s14  }
   0xe   : > { %p59_p0 = scmp.ne.s32.totalorder %s1749_s10, %s1745_s30  ;;  %p1866_p1 = scmp.eq.s32.totalorder %s1279_s15, 0 }
   0xf   : > { %p1870_p2 = scmp.eq.s32.totalorder %s1279_s15, 1  ;;  %p259_p3 = scmp.eq.s32.totalorder %s1280_s16, 1 }
  0x10   : > { %s2239_s17 = scalar_select %p1866_p1, 1, 0 }
  0x11   : > { %s2240_s18 = scalar_select %p1870_p2, 1, 0 }
  0x12   : > { %p1876_p4 = por %p1866_p1, %p59_p0  ;;  %p1281_p5 = scmp.ge.s32.totalorder %s1765_s14, 1 }
  0x13   : > { %p1881_p6 = por %p259_p3, %p59_p0  ;;  %p266_p7 = scmp.lt.s32.totalorder %s1765_s14, 3 }
  0x14   : > { %s2241_s19 = scalar_select %p1876_p4, 1, 0 }
  0x15   : > { %s2242_s20 = scalar_select %p1881_p6, 1, 0 }
  0x16   : > { %p1886_p8 = pnand %p1281_p5, %p266_p7  ;;  %s1767_s22 = smov [#allocation8]  }
  0x17   : > { %2243 = sst [smem:[#allocation20_spill]] %s2242_s20  ;;  %s278_s23 = sshll.u32 %s1767_s22, 4  ;;  %s1890_s23 = int_to_ptr.vmem [resolvable:$true] %s278_s23 }
  0x18   : > { %s2244_s21 = scalar_select %p1886_p8, 1, 0 }
  0x19   : > { %p1448_p9 = pneg %p1886_p8  ;;  %s1768_s25 = smov [#allocation10]  }
  0x1a   : > { %s291_s26 = sshll.u32 %s1768_s25, 4  ;;  %s1769_s27 = smov [#allocation11]   ;;  %s1901_s26 = int_to_ptr.vmem [resolvable:$true] %s291_s26 }
  0x1b   : > { %p1897_p11 = pnand %p1448_p9, %p1866_p1  ;;  %s1903_s28 = sshll.u32 %s1769_s27, 4  ;;  %s305_s28 = int_to_ptr.vmem [resolvable:$true] %s1903_s28 }
  0x1c   : > { %s1561_s16 = scalar_lea.hbm %s2217_s1, 256 }
  0x1d   : > { %p1562_p12 = scmp.ne.s32.totalorder %s2217_s1, %s1561_s16  ;;  %p1913_p13 = pneg %p1897_p11 }
  0x1e   : > { %p1568_p5 = scmp.lt.u32.totalorder %s1561_s16, %s2217_s1 }
  0x1f   : > { %p1564_p0 = pnand %p1913_p13, %p1562_p12 }
  0x21   : > { %p1565_p3 = pneg %p1564_p0 }
  0x23   : > { %p1570_p7 = pnand %p1568_p5, %p1565_p3 }
  0x25   : > { %1573 = shalt.err (!%p1570_p7)
}
  0x26   : > { %s1574_s20 = scalar_lea.vmem %s1890_s23, 256  ;;  %p1582_p1 = scmp.lt.s32.totalorder %s1890_s23, %s1890_s23 }
  0x27   : > { %p1575_p9 = scmp.ne.s32.totalorder %s1890_s23, %s1574_s20  ;;  %p1583_p4 = scmp.lt.s32.totalorder %s1574_s20, %s1574_s20 }
  0x29   : > { %p1577_p10 = pnand %p1575_p9, %p1913_p13  ;;  %p1584_p12 = por %p1583_p4, %p1582_p1 }
  0x2b   : > { %p1578_p6 = pneg %p1577_p10 }
  0x2d   : > { %p1585_p0 = pnand %p1584_p12, %p1578_p6 }
  0x2f   : > { %1588 = shalt.err (!%p1585_p0)
}
  0x30   : > { %s1770_s29 = smov 64   ;;  %s1771_s15 = smov 4  }
  0x31   : > { %1451 = dma.hbm_to_vmem [thread:$0]  (!%p1897_p11), %s2217_s1, 256, %s1890_s23, [#allocation9], %s1770_s29, %s1770_s29, %s1771_s15  }
  0x32   : > { %s1589_s20 = scalar_lea.hbm %s2218_s2, 256 }
  0x33   : > { %p1590_p1 = scmp.ne.s32.totalorder %s2218_s2, %s1589_s20  ;;  %p1596_p10 = scmp.lt.u32.totalorder %s1589_s20, %s2218_s2 }
  0x35   : > { %p1592_p4 = pnand %p1590_p1, %p1913_p13 }
  0x37   : > { %p1593_p6 = pneg %p1592_p4 }
  0x39   : > { %p1598_p3 = pnand %p1596_p10, %p1593_p6 }
  0x3b   : > { %1601 = shalt.err (!%p1598_p3)
}
  0x3c   : > { %s1602_s23 = scalar_lea.vmem %s1901_s26, 256  ;;  %p1610_p12 = scmp.lt.s32.totalorder %s1901_s26, %s1901_s26 }
  0x3d   : > { %p1603_p5 = scmp.ne.s32.totalorder %s1901_s26, %s1602_s23  ;;  %p1611_p0 = scmp.lt.s32.totalorder %s1602_s23, %s1602_s23 }
  0x3f   : > { %p1605_p7 = pnand %p1603_p5, %p1913_p13  ;;  %p1612_p1 = por %p1611_p0, %p1610_p12 }
  0x41   : > { %p1606_p9 = pneg %p1605_p7 }
  0x43   : > { %p1613_p4 = pnand %p1612_p1, %p1606_p9 }
  0x45   : > { %1616 = shalt.err (!%p1613_p4)
}
  0x46   : > { %1454 = dma.hbm_to_vmem [thread:$0]  (!%p1897_p11), %s2218_s2, 256, %s1901_s26, [#allocation9], %s1770_s29, %s1770_s29, %s1771_s15  }
  0x47   : > { %s1617_s16 = scalar_lea.hbm %s2219_s3, 256 }
  0x48   : > { %p1618_p6 = scmp.ne.s32.totalorder %s2219_s3, %s1617_s16  ;;  %p1624_p5 = scmp.lt.u32.totalorder %s1617_s16, %s2219_s3 }
  0x4a   : > { %p1620_p10 = pnand %p1618_p6, %p1913_p13 }
  0x4c   : > { %p1621_p3 = pneg %p1620_p10 }
  0x4e   : > { %p1626_p7 = pnand %p1624_p5, %p1621_p3 }
  0x50   : > { %1629 = shalt.err (!%p1626_p7)
}
  0x51   : > { %s1630_s23 = scalar_lea.vmem %s305_s28, 256  ;;  %p1638_p1 = scmp.lt.s32.totalorder %s305_s28, %s305_s28 }
  0x52   : > { %p1631_p9 = scmp.ne.s32.totalorder %s305_s28, %s1630_s23  ;;  %p1639_p4 = scmp.lt.s32.totalorder %s1630_s23, %s1630_s23 }
  0x54   : > { %p1633_p12 = pnand %p1631_p9, %p1913_p13  ;;  %p1640_p8 = por %p1639_p4, %p1638_p1 }
  0x56   : > { %p1634_p0 = pneg %p1633_p12 }
  0x58   : > { %p1641_p2 = pnand %p1640_p8, %p1634_p0 }
  0x5a   : > { %1644 = shalt.err (!%p1641_p2)
}
  0x5b   : > { %1457 = dma.hbm_to_vmem [thread:$0]  (!%p1897_p11), %s2219_s3, 256, %s305_s28, [#allocation12], %s1770_s29, %s1770_s29, %s1771_s15  }
  0x5c   : > { %s46_s30 = sadd.s32 1, %s1753_s11  ;;  %s39_s24 = sadd.s32 1, %s1761_s13 }
  0x5d   : > { %p53_p2 = scmp.ne.s32.totalorder %s1753_s11, %s1749_s10  ;;  %p41_p8 = scmp.ge.s32.totalorder %s39_s24, 2 }
  0x5e   : > { %p54_p13 = scmp.eq.s32.totalorder %s1765_s14, 0  ;;  %p2247_p6 = scmp.ne.s32.totalorder %s2240_s18, 0 }
  0x5f   : > { %p1469_p3 = scmp.lt.s32.totalorder %s1765_s14, 2  ;;  %s2267_s24 = smov (%p41_p8, %s39_s24), 0 }
  0x60   : > { %p1992_p10 = por %p2247_p6, %p53_p2  ;;  %p55_p5 = por %p54_p13, %p53_p2 }
  0x61   : > { %s333_s9 = sand.u32 1, %s1753_s11   ;;  %s43_s12 = ssub.s32 %s1761_s13, %s2267_s24 }
  0x62   : > { %p44_p7 = scmp.eq.s32.totalorder %s43_s12, 0  ;;  %s1286_s28 = sshll.u32 %s333_s9, 2 }
  0x63   : > { %s1287_s29 = sshll.u32 %s1761_s13, 6  ;;  %s337_s25 = scalar_lea.vmem [#allocation5], %s1286_s28 }
  0x64   : > { %s2004_s15 = scalar_select %p44_p7, %s1753_s11, %s46_s30  }
  0x65   : > { %s2009_s18 = scalar_lea.hbm %s2216_s0, %s1287_s29  ;;  %s344_s27 = sshll.u32 %s337_s25, 4  ;;  %s2011_s27 = int_to_ptr.vmem [resolvable:$true] %s344_s27 }
  0x66   : > { %p2015_p11 = pnand %p1469_p3, %p55_p5  ;;  %s334_s23 = scalar_lea.sflag [#allocation6], %s333_s9 }
  0x67   : > { %s1645_s26 = scalar_lea.hbm %s2009_s18, 64  ;;  %s1650_s12 = scalar_lea.hbm %s2216_s0, 128 }
  0x68   : > { %p1646_p9 = scmp.ne.s32.totalorder %s2009_s18, %s1645_s26  ;;  %p1647_p12 = pneg %p2015_p11 }
  0x69   : > { %p1651_p4 = scmp.lt.u32.totalorder %s2009_s18, %s2216_s0  ;;  %p1652_p2 = scmp.lt.u32.totalorder %s1650_s12, %s1645_s26 }
  0x6a   : > { %p1648_p0 = pnand %p1647_p12, %p1646_p9  ;;  %p1654_p13 = scmp.lt.u32.totalorder %s1645_s26, %s2009_s18 }
  0x6b   : > { %p1653_p8 = por %p1652_p2, %p1651_p4 }
  0x6c   : > { %p1649_p1 = pneg %p1648_p0 }
  0x6d   : > { %p1655_p6 = por %p1654_p13, %p1653_p8 }
  0x6f   : > { %p1656_p3 = pnand %p1655_p6, %p1649_p1 }
  0x71   : > { %1659 = shalt.err (!%p1656_p3)
}
  0x72   : > { %s1660_s9 = scalar_lea.vmem %s2011_s27, 64  ;;  %s1772_s16 = smov [#allocation5]  }
  0x73   : > { %p1661_p5 = scmp.ne.s32.totalorder %s2011_s27, %s1660_s9  ;;  %s1665_s22 = sshll.u32 %s1772_s16, 4  ;;  %s1666_s22 = int_to_ptr.vmem [resolvable:$false] %s1665_s22 }
  0x74   : > { %s1667_s25 = scalar_lea.vmem %s1666_s22, 128  ;;  %p1668_p0 = scmp.lt.s32.totalorder %s2011_s27, %s1666_s22 }
  0x75   : > { %p1663_p7 = pnand %p1661_p5, %p1647_p12  ;;  %p1669_p4 = scmp.lt.s32.totalorder %s1667_s25, %s1660_s9 }
  0x77   : > { %p1664_p9 = pneg %p1663_p7  ;;  %p1670_p2 = por %p1669_p4, %p1668_p0 }
  0x79   : > { %p1671_p8 = pnand %p1670_p2, %p1664_p9 }
  0x7b   : > { %1674 = shalt.err (!%p1671_p8)
}
  0x7c   : > { %1461 = dma.hbm_to_vmem [thread:$0]  (!%p2015_p11), %s2009_s18, 64, %s2011_s27, %s334_s23  }
  0x7d   : > { %p2250_p1 = scmp.ne.s32.totalorder %s2244_s21, 0 }
  0x7e   : > { %s2047_s26 = sand.u32 (!%p2250_p1), 1, %s1749_s10   ;;  %p2251_p12 = scmp.ne.s32.totalorder (!%p2250_p1), %s2241_s19, 0 }
  0x7f   : > { %353 = sbr.rel (%p2250_p1) target bundleno = 1454 (0x5ae), region = 56  ;;  %s1289_s7 = sshll.u32 (!%p2250_p1), %s2047_s26, 2 }
  0x80   : > { %s356_s30 = scalar_lea.sflag (!%p2250_p1), [#allocation6], %s2047_s26  ;;  %s359_s12 = scalar_lea.vmem (!%p2250_p1), [#allocation5], %s1289_s7 }
  0x86   : > { %1728 = dma.done.wait (%p2251_p12), %s356_s30, 64  }
  0x87   : > { %1730 = vsyncadd (%p2251_p12), %s356_s30, 4294967232  ;;  %p2252_p13 = scmp.ne.s32.totalorder %s2239_s17, 0 }
  0x89   : > { %1732 = dma.done.wait (%p2252_p13), [#allocation9], 512  }
  0x8a   : > { %1734 = vsyncadd (%p2252_p13), [#allocation9], 4294966784 }
  0x8b   : > { %1736 = dma.done.wait (%p2252_p13), [#allocation12], 256  }
  0x8c   : > { %1738 = vsyncadd (%p2252_p13), [#allocation12], 4294967040  ;;  %v1773_v0 = vmov 0.0   ;;  %vm1774_vm0 = vmmov 0   ;;  %v1535_v1 = vld [vmem:[#allocation10] sm:$0xff]   ;;  %v1536_v2 = vld [vmem:[#allocation10 + $0x8] sm:$0xff]  }
  0x8d   : > { %1352 = vmatprep.subr.bf16.mxu0 %v1773_v0  ;;  %1356 = vmatprep.mubr.msk.bf16.mxu0 %vm1774_vm0, %v1773_v0  ;;  %v411_v3 = vld [vmem:[%s359_s12] sm:$0xf]  ;;  %vm435_vm1 = vcmask 261120   ;;  %v1537_v4 = vld [vmem:[#allocation8] sm:$0xff]   ;;  %v1538_v5 = vld [vmem:[#allocation8 + $0x8] sm:$0xff]   ;;  %vm543_vm2 = vcmask 257024  }
  0x8e   : > { %1360 = vmatprep.subr.bf16.mxu1 %v1773_v0  ;;  %1364 = vmatprep.mubr.msk.bf16.mxu1 %vm1774_vm0, %v1773_v0  ;;  %v552_v6 = vld [vmem:[%s359_s12] sm:$0xf]  ;;  %v1539_v7 = vld [vmem:[#allocation11] sm:$0xff]   ;;  %v1540_v8 = vld [vmem:[#allocation11 + $0x8] sm:$0xff]   ;;  %vm623_vm3 = vcmask 64512   ;;  %s1775_s27 = smov 112  }
  0x8f   : > { %1353 = vmatpush3.bf16.msra.mxu0 %v1535_v1  ;;  %1361 = vmatpush3.bf16.msra.mxu1 %v1539_v7  ;;  %v1294_v9 = vld [vmem:[%s2221_s5] ss:$0 sm:$0xff]  ;;  %s1776_s20 = smov 120   ;;  %s1777_s23 = smov 104   ;;  %vm683_vm4 = vcmask 1043456   ;;  %vm851_vm5 = vcmask 130112  }
  0x90   : > { %1354 = vmatprep.subr.bf16.mxu0 %v1773_v0  ;;  %1362 = vmatprep.subr.bf16.mxu1 %v1773_v0  ;;  %v1302_v16 = vld [vmem:[%s2220_s4] ss:$0 sm:$0xff]  ;;  %s1778_s9 = smov 8   ;;  %s2253_s25 = sld [smem:[#allocation21_spill]]  ;;  %vm967_vm6 = vcmask 195712   ;;  %vm1083_vm7 = vcmask 261312  }
  0x91   : > { %v1298_v26 = vld [vmem:[%s2222_s6] ss:$0 sm:$0xff]  ;;  %s1779_s12 = smov 16   ;;  %s1780_s17 = smov 24  }
  0x92   : > { %s2254_s19 = sld [smem:[#allocation19_spill]]  ;;  %s1293_s21 = sshll.u32 %s2047_s26, 3 }
  0x93   : > { %1355 = vmatpush3.bf16.msra.mxu0 %v1536_v2  ;;  %1363 = vmatpush3.bf16.msra.mxu1 %v1540_v8  ;;  %s405_s28 = scalar_lea.vmem [#allocation13], %s1293_s21  ;;  %s2256_s22 = sld [smem:[#allocation23_spill]] }
  0x94   : > { %1368 = vmatprep.subr.bf16.mxu0 %v1773_v0  ;;  %1376 = vmatprep.subr.bf16.mxu1 %v1773_v0  ;;  %s1169_s29 = sshll.u32 %s405_s28, 4  ;;  %s1155_s30 = scalar_lea.sflag [#allocation7], %s2047_s26  ;;  %s2168_s29 = int_to_ptr.vmem [resolvable:$true] %s1169_s29 }
  0x96   : > { %1357 = vmatmul.mubr.msk.bf16.vlgmr.msra.gmra.mrb[0].mxu0 %vm435_vm1, %v411_v3  ;;  %1365 = vmatmul.mubr.msk.bf16.vlgmr.msra.gmra.mrb[0].mxu1 %vm435_vm1, %v411_v3 }
  0x97   : > { %1369 = vmatpush3.bf16.msra.mxu0 %v1537_v4  ;;  %1372 = vmatprep.mubr.msk.bf16.mxu0 %vm1774_vm0, %v1773_v0 }
  0x98   : > { %1370 = vmatprep.subr.bf16.mxu0 %v1773_v0  ;;  %1378 = vmatprep.mubr.msk.bf16.mxu1 %vm1774_vm0, %v1773_v0 }
  0x9b   : > { %1371 = vmatpush3.bf16.msra.mxu0 %v1538_v5 }
  0x9c   : > { %1382 = vmatprep.subr.bf16.mxu0 %v1773_v0 }
  0x9e   : > { %1373 = vmatmul.mubr.msk.bf16.vlgmr.msra.gmra.mrb[4].mxu0 %vm435_vm1, %v552_v6 }
  0x9f   : > { %1384 = vmatprep.mubr.msk.bf16.mxu0 %vm1774_vm0, %v1773_v0 }
 0x169   : > { %v473_v10 = vpop.f32.mrb[0].mxu0  ;;  %v536_v27 = vpop.f32.mrb[0].mxu1 }
 0x16a   : > { %v474_v11 = vadd.f32 %v1294_v9, %v473_v10  ;;  %v1358_v12 = vpop.f32.mrb[1].mxu0  ;;  %v537_v28 = vadd.f32 %v1298_v26, %v536_v27  ;;  %v1366_v29 = vpop.f32.mrb[1].mxu1 }
 0x16b   : > { %v476_v13 = vpop.f32.mrb[2].mxu0  ;;  %v539_v30 = vpop.f32.mrb[2].mxu1 }
 0x16c   : > { %v542_v14 = vpack.c.bf16 %v474_v11, %v474_v11  ;;  %v1359_v15 = vpop.f32.mrb[3].mxu0  ;;  %v545_v31 = vpack.c.bf16 %v537_v28, %v537_v28  ;;  %v1367_v32 = vpop.f32.mrb[3].mxu1 }
 0x16e   : > { %544 = vst.msk [vmem:[#allocation2] sm:$0xf] %vm543_vm2, %v542_v14  ;;  %546 = vst.msk [vmem:[#allocation3] sm:$0xf] %vm543_vm2, %v545_v31 }
 0x171   : > { %v614_v17 = vpop.f32.mrb[4].mxu0 }
 0x172   : > { %v1374_v18 = vpop.f32.mrb[5].mxu0  ;;  %v615_v20 = vadd.f32 %v1302_v16, %v614_v17 }
 0x173   : > { %v617_v19 = vpop.f32.mrb[6].mxu0 }
 0x174   : > { %v1375_v21 = vpop.f32.mrb[7].mxu0  ;;  %v620_v25 = vpack.c.bf16 %v615_v20, %v615_v20 }
 0x175   : > { %v621_v22 = vld [vmem:[#allocation2] sm:$0xf]  ;;  %v622_v33 = vld [vmem:[#allocation3] sm:$0xf] }
 0x176   : > { %v628_v23 = vsel %vm623_vm3, %v621_v22, 0  ;;  %v1308_v24 = vcombine.low %v621_v22, %v621_v22  ;;  %v685_v34 = vsel %vm683_vm4, %v622_v33, 0  ;;  %v1310_v62 = vcombine.low %v622_v33, %v622_v33 }
 0x177   : > { %1377 = vmatpush3.bf16.xpose.msra.mxu1 %v628_v23  ;;  %1383 = vmatpush3.bf16.msra.mxu0 %v685_v34 }
 0x178   : > { %855 = vrot.lane.b32.xlu1 %v1308_v24, %s1775_s27  ;;  %736 = vrot.lane.b32.xlu0 %v1308_v24, %s1776_s20 }
 0x179   : > { %1388 = vmatprep.subr.bf16.mxu1 %v1773_v0  ;;  %1394 = vmatprep.subr.bf16.mxu0 %v1773_v0 }
 0x17c   : > { %853 = vrot.lane.b32.xlu1 %v620_v25, %s1775_s27  ;;  %731 = vrot.lane.b32.xlu0 %v620_v25, %s1776_s20 }
 0x17e   : > { %1379 = vmatmul.mubr.msk.bf16.vlgmr.msra.gmra.mrb[4].mxu1 %vm623_vm3, %v620_v25 }
 0x17f   : > { %1390 = vmatprep.mubr.msk.bf16.mxu1 %vm1774_vm0, %v1773_v0 }
 0x180   : > { %969 = vrot.lane.b32.xlu1 %v620_v25, %s1777_s23  ;;  %971 = vrot.lane.b32.xlu0 %v1308_v24, %s1777_s23 }
 0x1ea   : > { %v737_v35 = vpop.permute.xlu0 %736  ;;  %v856_v37 = vpop.permute.xlu1 %855 }
 0x1eb   : > { %v742_v36 = vsel %vm623_vm3, %v737_v35, 0  ;;  %v861_v39 = vsel %vm623_vm3, %v856_v37, 0 }
 0x1ec   : > { %1389 = vmatpush3.bf16.xpose.msra.mxu1 %v742_v36 }
 0x1ed   : > { %1400 = vmatprep.subr.bf16.mxu1 %v1773_v0 }
 0x1ee   : > { %v732_v38 = vpop.permute.xlu0 %731  ;;  %v854_v41 = vpop.permute.xlu1 %853 }
 0x1f2   : > { %v972_v40 = vpop.permute.xlu0 %971  ;;  %v970_v43 = vpop.permute.xlu1 %969 }
 0x1f3   : > { %1391 = vmatmul.mubr.msk.bf16.vlgmr.msra.gmra.mrb[8].mxu1 %vm623_vm3, %v732_v38  ;;  %v977_v42 = vsel %vm623_vm3, %v972_v40, 0 }
 0x1f4   : > { %1401 = vmatpush3.bf16.xpose.msra.mxu1 %v861_v39  ;;  %1402 = vmatprep.mubr.msk.bf16.mxu1 %vm1774_vm0, %v1773_v0 }
 0x1f5   : > { %1412 = vmatprep.subr.bf16.mxu1 %v1773_v0 }
 0x1fb   : > { %1403 = vmatmul.mubr.msk.bf16.vlgmr.msra.gmra.mrb[12].mxu1 %vm623_vm3, %v854_v41 }
 0x1fc   : > { %1413 = vmatpush3.bf16.xpose.msra.mxu1 %v977_v42  ;;  %1414 = vmatprep.mubr.msk.bf16.mxu1 %vm1774_vm0, %v1773_v0 }
 0x1fd   : > { %1424 = vmatprep.subr.bf16.mxu1 %v1773_v0 }
 0x203   : > { %1415 = vmatmul.mubr.msk.bf16.vlgmr.msra.gmra.mrb[16].mxu1 %vm623_vm3, %v970_v43 }
 0x204   : > { %1428 = vmatprep.mubr.msk.bf16.mxu1 %vm1774_vm0, %v1773_v0 }
 0x251   : > { %v664_v44 = vpop.f32.mrb[4].mxu1 }
 0x252   : > { %v1380_v45 = vpop.f32.mrb[5].mxu1  ;;  %v670_v46 = vsel %vm623_vm3, %v664_v44, -inf }
 0x253   : > { %671 = vmax.xlane.f32.xlu0 %v670_v46  ;;  %v667_v47 = vpop.f32.mrb[6].mxu1 }
 0x254   : > { %v1381_v48 = vpop.f32.mrb[7].mxu1 }
 0x255   : > { %v1543_v48 = vld [vmem:[%s2253_s25] sm:$0xff]  }
 0x256   : > { %1425 = vmatpush3.bf16.msra.mxu1 %v1543_v48 }
 0x257   : > { %1426 = vmatprep.subr.bf16.mxu1 %v1773_v0 }
 0x2c6   : > { %v778_v49 = vpop.f32.mrb[8].mxu1 }
 0x2c7   : > { %v1392_v50 = vpop.f32.mrb[9].mxu1  ;;  %v784_v51 = vsel %vm623_vm3, %v778_v49, -inf }
 0x2c8   : > { %785 = vmax.xlane.f32.xlu1 %v784_v51  ;;  %v781_v52 = vpop.f32.mrb[10].mxu1  ;;  %v1544_v51 = vld [vmem:[%s2253_s25 + $0x8] sm:$0xff]  }
 0x2c9   : > { %v1393_v53 = vpop.f32.mrb[11].mxu1  ;;  %1427 = vmatpush3.bf16.msra.mxu1 %v1544_v51 }
 0x2ce   : > { %v897_v54 = vpop.f32.mrb[12].mxu1 }
 0x2cf   : > { %v1404_v55 = vpop.f32.mrb[13].mxu1  ;;  %v903_v56 = vsel %vm623_vm3, %v897_v54, -inf }
 0x2d0   : > { %904 = vmax.xlane.f32.xlu0 %v903_v56  ;;  %v900_v57 = vpop.f32.mrb[14].mxu1 }
 0x2d1   : > { %v1405_v58 = vpop.f32.mrb[15].mxu1 }
 0x2d6   : > { %v1013_v59 = vpop.f32.mrb[16].mxu1 }
 0x2d7   : > { %v1416_v60 = vpop.f32.mrb[17].mxu1  ;;  %v1019_v61 = vsel %vm623_vm3, %v1013_v59, -inf }
 0x2d8   : > { %1020 = vmax.xlane.f32.xlu0 %v1019_v61  ;;  %v1016_v63 = vpop.f32.mrb[18].mxu1 }
 0x2d9   : > { %797 = vrot.lane.b32.xlu1 %v1310_v62, %s1776_s20  ;;  %v1417_v1 = vpop.f32.mrb[19].mxu1  ;;  %s2255_s20 = sld [smem:[#allocation22_spill]] }
 0x2dd   : > { %1029 = vrot.lane.b32.xlu1 %v1310_v62, %s1777_s23  ;;  %s1321_s23 = sshll.u32 %s2254_s19, 7 }
 0x2de   : > { %s2166_s7 = scalar_lea.hbm %s2256_s22, %s1321_s23 }
 0x2e0   : > { %v672_v2 = vpop.xlane.xlu0 %671 }
 0x2e1   : > { %v673_v3 = vsub.f32 %v664_v44, %v672_v2 }
 0x2e3   : > { %v674_v4 = vmul.f32 1.442695, %v673_v3  ;;  %v1316_v3 = vld [vmem:[%s2255_s20] ss:$0 sm:$0xff] }
 0x2e5   : > { %1545 = vpow2.f32 %v674_v4 }
 0x2ee   : > { %913 = vrot.lane.b32.xlu0 %v1310_v62, %s1775_s27 }
 0x2ef   : > { %v1546_v5 = vpop.eup %1545 }
 0x2f0   : > { %v679_v6 = vpack.c.bf16 %v1546_v5, %v1546_v5  ;;  %v676_v22 = vsel %vm623_vm3, %v1546_v5, 0.0 }
 0x2f2   : > { %1385 = vmatmul.mubr.msk.bf16.vlgmr.msra.gmra.mrb[8].mxu0 %vm623_vm3, %v679_v6 }
 0x2f3   : > { %1396 = vmatprep.mubr.msk.bf16.mxu0 %vm1774_vm0, %v1773_v0 }
 0x355   : > { %v786_v7 = vpop.xlane.xlu1 %785 }
 0x356   : > { %v787_v8 = vsub.f32 %v778_v49, %v786_v7 }
 0x358   : > { %v788_v9 = vmul.f32 1.442695, %v787_v8 }
 0x359   : > { %v798_v10 = vpop.permute.xlu1 %797 }
 0x35a   : > { %1547 = vpow2.f32 %v788_v9  ;;  %v803_v11 = vsel %vm683_vm4, %v798_v10, 0 }
 0x35b   : > { %1395 = vmatpush3.bf16.msra.mxu0 %v803_v11 }
 0x35c   : > { %1406 = vmatprep.subr.bf16.mxu0 %v1773_v0 }
 0x35d   : > { %v905_v12 = vpop.xlane.xlu0 %904  ;;  %v1030_v25 = vpop.permute.xlu1 %1029 }
 0x35e   : > { %v906_v13 = vsub.f32 %v897_v54, %v905_v12  ;;  %v1035_v28 = vsel %vm683_vm4, %v1030_v25, 0 }
 0x360   : > { %v907_v14 = vmul.f32 1.442695, %v906_v13 }
 0x362   : > { %1549 = vpow2.f32 %v907_v14 }
 0x364   : > { %v1548_v15 = vpop.eup %1547 }
 0x365   : > { %v1021_v16 = vpop.xlane.xlu0 %1020  ;;  %v790_v17 = vsel %vm623_vm3, %v1548_v15, 0.0  ;;  %v793_v18 = vpack.c.bf16 %v1548_v15, %v1548_v15 }
 0x366   : > { %v1022_v19 = vsub.f32 %v1013_v59, %v1021_v16  ;;  %791 = vadd.xlane.f32.xlu1 %v790_v17 }
 0x367   : > { %1397 = vmatmul.mubr.msk.bf16.vlgmr.msra.gmra.mrb[12].mxu0 %vm623_vm3, %v793_v18 }
 0x368   : > { %v1023_v20 = vmul.f32 1.442695, %v1022_v19  ;;  %1408 = vmatprep.mubr.msk.bf16.mxu0 %vm1774_vm0, %v1773_v0 }
 0x369   : > { %v914_v21 = vpop.permute.xlu0 %913 }
 0x36a   : > { %1551 = vpow2.f32 %v1023_v20  ;;  %v919_v23 = vsel %vm683_vm4, %v914_v21, 0  ;;  %677 = vadd.xlane.f32.xlu1 %v676_v22 }
 0x36b   : > { %1407 = vmatpush3.bf16.msra.mxu0 %v919_v23 }
 0x36c   : > { %v1550_v24 = vpop.eup %1549  ;;  %1418 = vmatprep.subr.bf16.mxu0 %v1773_v0 }
 0x36d   : > { %v909_v26 = vsel %vm623_vm3, %v1550_v24, 0.0  ;;  %v912_v27 = vpack.c.bf16 %v1550_v24, %v1550_v24 }
 0x36e   : > { %910 = vadd.xlane.f32.xlu0 %v909_v26 }
 0x36f   : > { %1409 = vmatmul.mubr.msk.bf16.vlgmr.msra.gmra.mrb[16].mxu0 %vm623_vm3, %v912_v27 }
 0x370   : > { %1419 = vmatpush3.bf16.msra.mxu0 %v1035_v28  ;;  %1420 = vmatprep.mubr.msk.bf16.mxu0 %vm1774_vm0, %v1773_v0 }
 0x374   : > { %v1552_v29 = vpop.eup %1551 }
 0x375   : > { %v1025_v30 = vsel %vm623_vm3, %v1552_v29, 0.0  ;;  %v1028_v31 = vpack.c.bf16 %v1552_v29, %v1552_v29 }
 0x376   : > { %1026 = vadd.xlane.f32.xlu0 %v1025_v30 }
 0x377   : > { %1421 = vmatmul.mubr.msk.bf16.vlgmr.msra.gmra.mrb[20].mxu0 %vm623_vm3, %v1028_v31 }
 0x3c5   : > { %v721_v32 = vpop.f32.mrb[8].mxu0 }
 0x3c6   : > { %v1386_v33 = vpop.f32.mrb[9].mxu0 }
 0x3c7   : > { %v724_v34 = vpop.f32.mrb[10].mxu0 }
 0x3c8   : > { %v1387_v35 = vpop.f32.mrb[11].mxu0 }
 0x3f3   : > { %v792_v36 = vpop.xlane.xlu1 %791 }
 0x3f7   : > { %v678_v37 = vpop.xlane.xlu1 %677 }
 0x3f8   : > { %1553 = vrcp.f32 %v678_v37 }
 0x3f9   : > { %1555 = vrcp.f32 %v792_v36 }
 0x3fb   : > { %v911_v40 = vpop.xlane.xlu0 %910 }
 0x3fc   : > { %1557 = vrcp.f32 %v911_v40 }
 0x402   : > { %v1554_v38 = vpop.eup %1553 }
 0x403   : > { %v728_v39 = vmul.f32 %v1554_v38, %v721_v32  ;;  %v1556_v41 = vpop.eup %1555  ;;  %v1027_v46 = vpop.xlane.xlu0 %1026 }
 0x404   : > { %1559 = vrcp.f32 %v1027_v46 }
 0x405   : > { %729 = vst.msk [vmem:[#allocation4] sm:$0xff] %vm623_vm3, %v728_v39 }
 0x406   : > { %v1558_v49 = vpop.eup %1557 }
 0x40e   : > { %v1560_v56 = vpop.eup %1559 }
 0x43a   : > { %v839_v42 = vpop.f32.mrb[12].mxu0 }
 0x43b   : > { %v846_v43 = vmul.f32 %v1556_v41, %v839_v42  ;;  %v1398_v44 = vpop.f32.mrb[13].mxu0 }
 0x43c   : > { %v842_v45 = vpop.f32.mrb[14].mxu0 }
 0x43d   : > { %848 = vrot.lane.b32.xlu0 %v846_v43, %s1778_s9  ;;  %v1399_v47 = vpop.f32.mrb[15].mxu0 }
 0x442   : > { %v955_v50 = vpop.f32.mrb[16].mxu0 }
 0x443   : > { %v962_v52 = vmul.f32 %v1558_v49, %v955_v50  ;;  %v1410_v53 = vpop.f32.mrb[17].mxu0 }
 0x444   : > { %v958_v54 = vpop.f32.mrb[18].mxu0 }
 0x445   : > { %964 = vrot.lane.b32.xlu1 %v962_v52, %s1779_s12  ;;  %v1411_v55 = vpop.f32.mrb[19].mxu0  ;;  %s1675_s12 = scalar_lea.vmem %s2168_s29, 128 }
 0x446   : > { %p1676_p11 = scmp.ne.s32.totalorder %s2168_s29, %s1675_s12 }
 0x448   : > { %p1677_p6 = pnand %p1676_p11, %p1992_p10 }
 0x44a   : > { %v1071_v57 = vpop.f32.mrb[20].mxu0  ;;  %p1678_p3 = pneg %p1677_p6 }
 0x44b   : > { %v1078_v58 = vmul.f32 %v1560_v56, %v1071_v57  ;;  %v1422_v59 = vpop.f32.mrb[21].mxu0 }
 0x44c   : > { %v1074_v60 = vpop.f32.mrb[22].mxu0 }
 0x44d   : > { %1080 = vrot.lane.b32.xlu1 %v1078_v58, %s1780_s17  ;;  %v1423_v61 = vpop.f32.mrb[23].mxu0  ;;  %s1781_s17 = smov [#allocation13]  }
 0x44e   : > { %s1679_s19 = sshll.u32 %s1781_s17, 4  ;;  %s1680_s19 = int_to_ptr.vmem [resolvable:$false] %s1679_s19 }
 0x44f   : > { %s1681_s21 = scalar_lea.vmem %s1680_s19, 256  ;;  %p1682_p5 = scmp.lt.s32.totalorder %s2168_s29, %s1680_s19 }
 0x450   : > { %p1683_p7 = scmp.lt.s32.totalorder %s1681_s21, %s1675_s12 }
 0x452   : > { %p1684_p9 = por %p1683_p7, %p1682_p5 }
 0x454   : > { %p1685_p0 = pnand %p1684_p9, %p1678_p3 }
 0x4af   : > { %v849_v62 = vpop.permute.xlu0 %848 }
 0x4b0   : > { %852 = vst.msk [vmem:[#allocation4] sm:$0xff] %vm851_vm5, %v849_v62 }
 0x4b7   : > { %v965_v0 = vpop.permute.xlu1 %964 }
 0x4b8   : > { %968 = vst.msk [vmem:[#allocation4] sm:$0xff] %vm967_vm6, %v965_v0 }
 0x4bf   : > { %v1081_v63 = vpop.permute.xlu1 %1080 }
 0x4c0   : > { %1084 = vst.msk [vmem:[#allocation4] sm:$0xff] %vm1083_vm7, %v1081_v63 }
 0x4c7   : > { %v1085_v1 = vld [vmem:[#allocation4] sm:$0xff] }
 0x4c8   : > { %v1086_v2 = vpack.c.bf16 %v1085_v1, %v1085_v1 }
 0x4ca   : > { %1429 = vmatmul.mubr.msk.bf16.vlgmr.msra.gmra.mrb[20].mxu1 %vm435_vm1, %v1086_v2 }
 0x59d   : > { %v1147_v4 = vpop.f32.mrb[20].mxu1 }
 0x59e   : > { %v1148_v5 = vadd.f32 %v1316_v3, %v1147_v4  ;;  %v1430_v6 = vpop.f32.mrb[21].mxu1 }
 0x59f   : > { %v1150_v7 = vpop.f32.mrb[22].mxu1 }
 0x5a0   : > { %v1431_v8 = vpop.f32.mrb[23].mxu1  ;;  %1153 = vst.msk [vmem:[%s405_s28] sm:$0xff] %vm435_vm1, %v1148_v5 }
 0x5a1   : > { %1688 = shalt.err (!%p1685_p0)
}
 0x5a2   : > { %s1689_s26 = scalar_lea.hbm %s2166_s7, 128  ;;  %s1693_s20 = scalar_lea.hbm %s2256_s22, 256 }
 0x5a3   : > { %p1690_p4 = scmp.ne.s32.totalorder %s2166_s7, %s1689_s26  ;;  %p1694_p1 = scmp.lt.u32.totalorder %s2166_s7, %s2256_s22 }
 0x5a4   : > { %p1695_p12 = scmp.lt.u32.totalorder %s1693_s20, %s1689_s26  ;;  %p1697_p11 = scmp.lt.u32.totalorder %s1689_s26, %s2166_s7 }
 0x5a5   : > { %p1691_p2 = pnand %p1690_p4, %p1992_p10 }
 0x5a6   : > { %p1696_p13 = por %p1695_p12, %p1694_p1 }
 0x5a7   : > { %p1692_p8 = pneg %p1691_p2 }
 0x5a8   : > { %p1698_p6 = por %p1697_p11, %p1696_p13 }
 0x5aa   : > { %p1699_p3 = pnand %p1698_p6, %p1692_p8 }
 0x5ac   : > { %1702 = shalt.err (!%p1699_p3)
}
 0x5ad   : > { %1446 = dma.vmem_to_hbm [thread:$0]  (%p1992_p10), %s2168_s29, 128, %s2166_s7, %s1155_s30  }
 0x5ae PF: > { %s2257_s9 = sld [smem:[#allocation18_spill]]  ;;  %s2258_s16 = sld [smem:[#allocation20_spill]] }
 0x5af   : > { %p2260_p7 = scmp.ge.s32.totalorder %s1765_s14, 2 }
 0x5b4   : > { %s1181_s12 = sand.u32 1, %s2257_s9   ;;  %p2259_p5 = scmp.ne.s32.totalorder %s2258_s16, 0 }
 0x5b5   : > { %s1182_s17 = scalar_lea.sflag [#allocation7], %s1181_s12 }
 0x5b6   : > { %p1463_p9 = pnand %p2260_p7, %p2259_p5 }
 0x5b8   : > { %1740 = dma.done.wait (!%p1463_p9), %s1182_s17, 128  }
 0x5b9   : > { %1742 = vsyncadd (!%p1463_p9), %s1182_s17, 4294967168  ;;  %s27_s14 = sadd.s32 1, %s1765_s14   ;;  %s2261_s30 = smov %s1749_s10 }
 0x5ba   : > { %p24_p0 = scmp.ge.s32.totalorder %s27_s14, 4   ;;  %s2262_s10 = smov %s1753_s11 }
 0x5bb   : > { %s2263_s11 = smov %s2004_s15  ;;  %s2264_s12 = smov %s1761_s13 }
 0x5bc   : > { %s2265_s13 = smov %s2267_s24  ;;  %26 = sbr.rel (!%p24_p0) target bundleno = 12 (0xc), region = 118 }
 0x5c3   :  { %1187 = vsyncpa [#allocation6], 1 }
 0x5c4   :  { %1189 = vsyncpa [#allocation6 + $0x1], 1 }
 0x5c5   :  { %1190 = vsyncpa [#allocation9], 1 }
 0x5c6   :  { %1191 = vsyncpa [#allocation12], 1 }
 0x5c7   :  { %1192 = vsyncpa [#allocation7], 1 }
 0x5c8   :  { %1194 = vsyncpa [#allocation7 + $0x1], 1 }

</bundles_post_ra>
